<compile_context>
chip_gen: v6e
topology: v6e:2x2x1
jax: 0.10.0
libtpu: 0.0.40
codegen_flags: <defaults>
</compile_context>

<pallas_src>
import math

import numpy as np
import jax
import jax.numpy as jnp
from jax.experimental import pallas as pl
from jax.experimental.pallas import tpu as pltpu


# ----------------------------------------------------------------------------
# Fused forward kernel (one batch element per grid step)
# ----------------------------------------------------------------------------

def _swin_qformer_kernel(
    inst_ref, mm_ref, q_ref, bias_ref,
    ip_w_ref, ip_b_ref,
    ki_w_ref, ki_b_ref, vi_w_ref, vi_b_ref,
    oi_w_ref, oi_b_ref,
    km_w_ref, km_b_ref, vm_w_ref, vm_b_ref,
    om_w_ref, om_b_ref,
    g_ref, beta_ref,
    o_ref,
):
    D = q_ref.shape[-1]
    g = g_ref[...]            # (1, D)
    beta = beta_ref[...]      # (1, D)
    scale = 1.0 / math.sqrt(D)

    def ln(x):
        # LayerNorm over last dim, eps matches torch default (1e-5).
        mu = jnp.mean(x, axis=-1, keepdims=True)
        var = jnp.mean(jnp.square(x - mu), axis=-1, keepdims=True)
        return (x - mu) * jax.lax.rsqrt(var + 1e-5) * g + beta

    def softmax_rows(s):
        s = s - jnp.max(s, axis=-1, keepdims=True)
        p = jnp.exp(s)
        return p * pl.reciprocal(jnp.sum(p, axis=-1, keepdims=True), approx=True)

    def qk_scores(q, k):
        # q @ k.T without an explicit transpose: contract last dims.
        return jax.lax.dot_general(
            q, k, (((1,), (1,)), ((), ())), preferred_element_type=jnp.float32)

    # ---------------- instruction branch ----------------
    inst = inst_ref[0]                                            # (Ni, Di)
    h = jnp.dot(inst, ip_w_ref[...],
                preferred_element_type=jnp.float32) + ip_b_ref[...]
    k = ln(jnp.dot(h, ki_w_ref[...],
                   preferred_element_type=jnp.float32) + ki_b_ref[...])
    v = ln(jnp.dot(h, vi_w_ref[...],
                   preferred_element_type=jnp.float32) + vi_b_ref[...])

    q = q_ref[0] * scale                                          # (Nq, D), scale folded in
    p = softmax_rows(qk_scores(q, k))                             # (Nq, Ni)
    q = jnp.dot(p, v, preferred_element_type=jnp.float32)         # (Nq, D)
    q = jnp.dot(q, oi_w_ref[...],
                preferred_element_type=jnp.float32) + oi_b_ref[...]
    q = ln(q)

    # ---------------- multimodal branch (swin attention as masked dense) ----------------
    mm = mm_ref[0]                                                # (M, Dm)
    k = ln(jnp.dot(mm, km_w_ref[...],
                   preferred_element_type=jnp.float32) + km_b_ref[...])
    v = ln(jnp.dot(mm, vm_w_ref[...],
                   preferred_element_type=jnp.float32) + vm_b_ref[...])

    s = qk_scores(q * scale, k) + bias_ref[...]                   # (Nq, M), -1e30 off-window
    p = softmax_rows(s)
    out = jnp.dot(p, v, preferred_element_type=jnp.float32)       # (Nq, D)
    out = jnp.dot(out, om_w_ref[...],
                  preferred_element_type=jnp.float32) + om_b_ref[...]
    out = ln(out)

    o_ref[0] = out.astype(o_ref.dtype)


# ----------------------------------------------------------------------------
# Host-side glue: window bias (static), parameter setup, wrapper
# ----------------------------------------------------------------------------

def _window_bias(nq, m, w):
    """Additive attention bias reproducing split_tensor's overlapping windows.

    bias[i, j] == 0 if key j is inside query i's window, -1e30 otherwise.
    """
    w = min(w, m)
    step = max(1, (m - w) // max(1, nq - 1))   # guard nq == 1 (original divides by n-1)
    bias = np.full((nq, m), -1e30, dtype=np.float32)
    for i in range(nq):
        start = i * step
        end = start + w
        if end > m:
            start, end = m - w, m
        bias[i, start:end] = 0.0
    return jnp.asarray(bias)


def init_params(key, cfg):
    D = cfg["hidden_size"]
    Di = cfg["instruction_hidden_size"]
    Dm = cfg["mmodal_hidden_size"]
    nq = cfg["num_queries"]

    def lin(k, din, dout):
        k1, k2 = jax.random.split(k)
        w = jax.random.normal(k1, (din, dout), jnp.float32) * (1.0 / math.sqrt(din))
        b = jax.random.normal(k2, (dout,), jnp.float32) * 0.01
        return w, b

    ks = jax.random.split(key, 6)
    p = {}
    p["inst_proj_w"], p["inst_proj_b"] = lin(ks[0], Di, D)
    p["queries"] = jax.random.normal(ks[1], (1, nq, D), jnp.float32)
    p["norm_g"] = jnp.ones((D,), jnp.float32)
    p["norm_b"] = jnp.zeros((D,), jnp.float32)
    p["to_kv_inst_w"], p["to_kv_inst_b"] = lin(ks[2], D, 2 * D)
    p["to_out_inst_w"], p["to_out_inst_b"] = lin(ks[3], D, D)
    p["to_kv_mmodal_w"], p["to_kv_mmodal_b"] = lin(ks[4], Dm, 2 * D)
    p["to_out_mmodal_w"], p["to_out_mmodal_b"] = lin(ks[5], D, D)
    return p


def swin_qformer_forward(params, x_mmodal, inst_feats, window_size):
    B, M, Dm = x_mmodal.shape
    _, Ni, Di = inst_feats.shape
    _, Nq, D = params["queries"].shape

    bias = _window_bias(Nq, M, window_size)

    # Split the fused kv projections host-side (free) so the kernel never has to
    # lane-slice an activation.
    ki_w, vi_w = params["to_kv_inst_w"][:, :D], params["to_kv_inst_w"][:, D:]
    ki_b, vi_b = params["to_kv_inst_b"][:D], params["to_kv_inst_b"][D:]
    km_w, vm_w = params["to_kv_mmodal_w"][:, :D], params["to_kv_mmodal_w"][:, D:]
    km_b, vm_b = params["to_kv_mmodal_b"][:D], params["to_kv_mmodal_b"][D:]

    row = lambda t: t.reshape(1, -1)

    def fixed(shape):
        nd = len(shape)
        return pl.BlockSpec(shape, lambda b, _nd=nd: (0,) * _nd)

    in_specs = [
        pl.BlockSpec((1, Ni, Di), lambda b: (b, 0, 0)),   # instruction features
        pl.BlockSpec((1, M, Dm), lambda b: (b, 0, 0)),    # multimodal features
        fixed((1, Nq, D)),                                # learned queries (shared, no broadcast)
        fixed((Nq, M)),                                   # window bias
        fixed((Di, D)), fixed((1, D)),                    # inst_projection
        fixed((D, D)), fixed((1, D)),                     # to_k_inst
        fixed((D, D)), fixed((1, D)),                     # to_v_inst
        fixed((D, D)), fixed((1, D)),                     # to_out_inst
        fixed((Dm, D)), fixed((1, D)),                    # to_k_mmodal
        fixed((Dm, D)), fixed((1, D)),                    # to_v_mmodal
        fixed((D, D)), fixed((1, D)),                     # to_out_mmodal
        fixed((1, D)), fixed((1, D)),                     # shared LayerNorm gamma/beta
    ]

    out = pl.pallas_call(
        _swin_qformer_kernel,
        grid=(B,),
        in_specs=in_specs,
        out_specs=pl.BlockSpec((1, Nq, D), lambda b: (b, 0, 0)),
        out_shape=jax.ShapeDtypeStruct((B, Nq, D), x_mmodal.dtype),
        compiler_params=pltpu.CompilerParams(dimension_semantics=("parallel",)),
    )(
        inst_feats, x_mmodal, params["queries"], bias,
        params["inst_proj_w"], row(params["inst_proj_b"]),
        ki_w, row(ki_b), vi_w, row(vi_b),
        params["to_out_inst_w"], row(params["to_out_inst_b"]),
        km_w, row(km_b), vm_w, row(vm_b),
        params["to_out_mmodal_w"], row(params["to_out_mmodal_b"]),
        row(params["norm_g"]), row(params["norm_b"]),
    )
    return out


if __name__ == "__main__":
    cfg = dict(
        hidden_size=32,
        instruction_hidden_size=64,
        mmodal_hidden_size=64,
        num_queries=8,
        window_size=8,
    )
    key = jax.random.PRNGKey(0)
    kp, k1, k2 = jax.random.split(key, 3)
    params = init_params(kp, cfg)

    B, M_mm, N_inst = 2, 16, 8
    x_mmodal = jax.random.normal(k1, (B, M_mm, cfg["mmodal_hidden_size"]), jnp.float32)
    # precomputed instruction-tower features (see TODO(synk) note at top)
    x_inst_feats = jax.random.normal(
        k2, (B, N_inst, cfg["instruction_hidden_size"]), jnp.float32)

    out = swin_qformer_forward(params, x_mmodal, x_inst_feats, cfg["window_size"])
    out = jax.block_until_ready(out)
    assert out.shape == (B, cfg["num_queries"], cfg["hidden_size"])
    assert bool(jnp.all(jnp.isfinite(out)))
    print("KERNEL_OK")
</pallas_src>

<mosaic_0001>
module attributes {stable_mosaic.version = 11 : i64} {
  func.func @_swin_qformer_kernel(%arg0: i32, %arg1: memref<1x8x64xf32, #tpu.memory_space<vmem>>, %arg2: memref<1x16x64xf32, #tpu.memory_space<vmem>>, %arg3: memref<1x8x32xf32, #tpu.memory_space<vmem>>, %arg4: memref<8x16xf32, #tpu.memory_space<vmem>>, %arg5: memref<64x32xf32, #tpu.memory_space<vmem>>, %arg6: memref<1x32xf32, #tpu.memory_space<vmem>>, %arg7: memref<32x32xf32, #tpu.memory_space<vmem>>, %arg8: memref<1x32xf32, #tpu.memory_space<vmem>>, %arg9: memref<32x32xf32, #tpu.memory_space<vmem>>, %arg10: memref<1x32xf32, #tpu.memory_space<vmem>>, %arg11: memref<32x32xf32, #tpu.memory_space<vmem>>, %arg12: memref<1x32xf32, #tpu.memory_space<vmem>>, %arg13: memref<64x32xf32, #tpu.memory_space<vmem>>, %arg14: memref<1x32xf32, #tpu.memory_space<vmem>>, %arg15: memref<64x32xf32, #tpu.memory_space<vmem>>, %arg16: memref<1x32xf32, #tpu.memory_space<vmem>>, %arg17: memref<32x32xf32, #tpu.memory_space<vmem>>, %arg18: memref<1x32xf32, #tpu.memory_space<vmem>>, %arg19: memref<1x32xf32, #tpu.memory_space<vmem>>, %arg20: memref<1x32xf32, #tpu.memory_space<vmem>>, %arg21: memref<1x8x32xf32, #tpu.memory_space<vmem>>) attributes {dimension_semantics = [#tpu.dimension_semantics<parallel>], iteration_bounds = array<i64: 2>, scalar_prefetch = 0 : i64, scratch_operands = 0 : i64, tpu.core_type = #tpu.core_type<tc>, window_params = [{transform_indices = @transform_0, window_bounds = array<i64: 1, 8, 64>}, {transform_indices = @transform_1, window_bounds = array<i64: 1, 16, 64>}, {pipeline_mode = #tpu.pipeline_mode<synchronous>, transform_indices = @transform_2, window_bounds = array<i64: 1, 8, 32>}, {pipeline_mode = #tpu.pipeline_mode<synchronous>, transform_indices = @transform_3, window_bounds = array<i64: 8, 16>}, {pipeline_mode = #tpu.pipeline_mode<synchronous>, transform_indices = @transform_4, window_bounds = array<i64: 64, 32>}, {pipeline_mode = #tpu.pipeline_mode<synchronous>, transform_indices = @transform_5, window_bounds = array<i64: 1, 32>}, {pipeline_mode = #tpu.pipeline_mode<synchronous>, transform_indices = @transform_6, window_bounds = array<i64: 32, 32>}, {pipeline_mode = #tpu.pipeline_mode<synchronous>, transform_indices = @transform_7, window_bounds = array<i64: 1, 32>}, {pipeline_mode = #tpu.pipeline_mode<synchronous>, transform_indices = @transform_8, window_bounds = array<i64: 32, 32>}, {pipeline_mode = #tpu.pipeline_mode<synchronous>, transform_indices = @transform_9, window_bounds = array<i64: 1, 32>}, {pipeline_mode = #tpu.pipeline_mode<synchronous>, transform_indices = @transform_10, window_bounds = array<i64: 32, 32>}, {pipeline_mode = #tpu.pipeline_mode<synchronous>, transform_indices = @transform_11, window_bounds = array<i64: 1, 32>}, {pipeline_mode = #tpu.pipeline_mode<synchronous>, transform_indices = @transform_12, window_bounds = array<i64: 64, 32>}, {pipeline_mode = #tpu.pipeline_mode<synchronous>, transform_indices = @transform_13, window_bounds = array<i64: 1, 32>}, {pipeline_mode = #tpu.pipeline_mode<synchronous>, transform_indices = @transform_14, window_bounds = array<i64: 64, 32>}, {pipeline_mode = #tpu.pipeline_mode<synchronous>, transform_indices = @transform_15, window_bounds = array<i64: 1, 32>}, {pipeline_mode = #tpu.pipeline_mode<synchronous>, transform_indices = @transform_16, window_bounds = array<i64: 32, 32>}, {pipeline_mode = #tpu.pipeline_mode<synchronous>, transform_indices = @transform_17, window_bounds = array<i64: 1, 32>}, {pipeline_mode = #tpu.pipeline_mode<synchronous>, transform_indices = @transform_18, window_bounds = array<i64: 1, 32>}, {pipeline_mode = #tpu.pipeline_mode<synchronous>, transform_indices = @transform_19, window_bounds = array<i64: 1, 32>}, {transform_indices = @transform_20, window_bounds = array<i64: 1, 8, 32>}]} {
    %c0 = arith.constant 0 : index
    %c0_0 = arith.constant 0 : index
    %0 = vector.load %arg19[%c0, %c0_0] : memref<1x32xf32, #tpu.memory_space<vmem>>, vector<1x32xf32>
    %c0_1 = arith.constant 0 : index
    %c0_2 = arith.constant 0 : index
    %1 = vector.load %arg20[%c0_1, %c0_2] : memref<1x32xf32, #tpu.memory_space<vmem>>, vector<1x32xf32>
    %c0_3 = arith.constant 0 : index
    %c0_4 = arith.constant 0 : index
    %c0_5 = arith.constant 0 : index
    %2 = vector.load %arg1[%c0_3, %c0_4, %c0_5] : memref<1x8x64xf32, #tpu.memory_space<vmem>>, vector<1x8x64xf32>
    %3 = vector.shape_cast %2 : vector<1x8x64xf32> to vector<8x64xf32>
    %c0_6 = arith.constant 0 : index
    %c0_7 = arith.constant 0 : index
    %4 = vector.load %arg5[%c0_6, %c0_7] : memref<64x32xf32, #tpu.memory_space<vmem>>, vector<64x32xf32>
    %cst = arith.constant dense<0.000000e+00> : vector<8x32xf32>
    %5 = tpu.matmul %3, %4, %cst {dimension_numbers = #tpu.dot_dimension_numbers<[1], [0], [0], [1], [0, 0, 1, 1], [], []>} : vector<8x64xf32>, vector<64x32xf32>, vector<8x32xf32> -> vector<8x32xf32>
    %c0_8 = arith.constant 0 : index
    %c0_9 = arith.constant 0 : index
    %6 = vector.load %arg6[%c0_8, %c0_9] : memref<1x32xf32, #tpu.memory_space<vmem>>, vector<1x32xf32>
    %7 = vector.broadcast %6 : vector<1x32xf32> to vector<8x32xf32>
    %8 = arith.addf %5, %7 : vector<8x32xf32>
    %c0_10 = arith.constant 0 : index
    %c0_11 = arith.constant 0 : index
    %9 = vector.load %arg7[%c0_10, %c0_11] : memref<32x32xf32, #tpu.memory_space<vmem>>, vector<32x32xf32>
    %cst_12 = arith.constant dense<0.000000e+00> : vector<8x32xf32>
    %10 = tpu.matmul %8, %9, %cst_12 {dimension_numbers = #tpu.dot_dimension_numbers<[1], [0], [0], [1], [0, 0, 1, 1], [], []>} : vector<8x32xf32>, vector<32x32xf32>, vector<8x32xf32> -> vector<8x32xf32>
    %c0_13 = arith.constant 0 : index
    %c0_14 = arith.constant 0 : index
    %11 = vector.load %arg8[%c0_13, %c0_14] : memref<1x32xf32, #tpu.memory_space<vmem>>, vector<1x32xf32>
    %12 = vector.broadcast %11 : vector<1x32xf32> to vector<8x32xf32>
    %13 = arith.addf %10, %12 : vector<8x32xf32>
    %cst_15 = arith.constant dense<0.000000e+00> : vector<8xf32>
    %14 = vector.multi_reduction <add>, %13, %cst_15 [1] : vector<8x32xf32> to vector<8xf32>
    %15 = vector.shape_cast %14 : vector<8xf32> to vector<8x1xf32>
    %cst_16 = arith.constant 3.200000e+01 : f32
    %16 = vector.broadcast %cst_16 : f32 to vector<8x1xf32>
    %17 = arith.divf %15, %16 : vector<8x1xf32>
    %18 = vector.broadcast %17 : vector<8x1xf32> to vector<8x32xf32>
    %19 = arith.subf %13, %18 : vector<8x32xf32>
    %20 = arith.mulf %19, %19 : vector<8x32xf32>
    %cst_17 = arith.constant dense<0.000000e+00> : vector<8xf32>
    %21 = vector.multi_reduction <add>, %20, %cst_17 [1] : vector<8x32xf32> to vector<8xf32>
    %22 = vector.shape_cast %21 : vector<8xf32> to vector<8x1xf32>
    %cst_18 = arith.constant 3.200000e+01 : f32
    %23 = vector.broadcast %cst_18 : f32 to vector<8x1xf32>
    %24 = arith.divf %22, %23 : vector<8x1xf32>
    %25 = vector.broadcast %17 : vector<8x1xf32> to vector<8x32xf32>
    %26 = arith.subf %13, %25 : vector<8x32xf32>
    %cst_19 = arith.constant 9.99999974E-6 : f32
    %27 = vector.broadcast %cst_19 : f32 to vector<8x1xf32>
    %28 = arith.addf %24, %27 : vector<8x1xf32>
    %29 = math.rsqrt %28 : vector<8x1xf32>
    %30 = vector.broadcast %29 : vector<8x1xf32> to vector<8x32xf32>
    %31 = arith.mulf %26, %30 : vector<8x32xf32>
    %32 = vector.broadcast %0 : vector<1x32xf32> to vector<8x32xf32>
    %33 = arith.mulf %31, %32 : vector<8x32xf32>
    %34 = vector.broadcast %1 : vector<1x32xf32> to vector<8x32xf32>
    %35 = arith.addf %33, %34 : vector<8x32xf32>
    %c0_20 = arith.constant 0 : index
    %c0_21 = arith.constant 0 : index
    %36 = vector.load %arg9[%c0_20, %c0_21] : memref<32x32xf32, #tpu.memory_space<vmem>>, vector<32x32xf32>
    %cst_22 = arith.constant dense<0.000000e+00> : vector<8x32xf32>
    %37 = tpu.matmul %8, %36, %cst_22 {dimension_numbers = #tpu.dot_dimension_numbers<[1], [0], [0], [1], [0, 0, 1, 1], [], []>} : vector<8x32xf32>, vector<32x32xf32>, vector<8x32xf32> -> vector<8x32xf32>
    %c0_23 = arith.constant 0 : index
    %c0_24 = arith.constant 0 : index
    %38 = vector.load %arg10[%c0_23, %c0_24] : memref<1x32xf32, #tpu.memory_space<vmem>>, vector<1x32xf32>
    %39 = vector.broadcast %38 : vector<1x32xf32> to vector<8x32xf32>
    %40 = arith.addf %37, %39 : vector<8x32xf32>
    %cst_25 = arith.constant dense<0.000000e+00> : vector<8xf32>
    %41 = vector.multi_reduction <add>, %40, %cst_25 [1] : vector<8x32xf32> to vector<8xf32>
    %42 = vector.shape_cast %41 : vector<8xf32> to vector<8x1xf32>
    %cst_26 = arith.constant 3.200000e+01 : f32
    %43 = vector.broadcast %cst_26 : f32 to vector<8x1xf32>
    %44 = arith.divf %42, %43 : vector<8x1xf32>
    %45 = vector.broadcast %44 : vector<8x1xf32> to vector<8x32xf32>
    %46 = arith.subf %40, %45 : vector<8x32xf32>
    %47 = arith.mulf %46, %46 : vector<8x32xf32>
    %cst_27 = arith.constant dense<0.000000e+00> : vector<8xf32>
    %48 = vector.multi_reduction <add>, %47, %cst_27 [1] : vector<8x32xf32> to vector<8xf32>
    %49 = vector.shape_cast %48 : vector<8xf32> to vector<8x1xf32>
    %cst_28 = arith.constant 3.200000e+01 : f32
    %50 = vector.broadcast %cst_28 : f32 to vector<8x1xf32>
    %51 = arith.divf %49, %50 : vector<8x1xf32>
    %52 = vector.broadcast %44 : vector<8x1xf32> to vector<8x32xf32>
    %53 = arith.subf %40, %52 : vector<8x32xf32>
    %cst_29 = arith.constant 9.99999974E-6 : f32
    %54 = vector.broadcast %cst_29 : f32 to vector<8x1xf32>
    %55 = arith.addf %51, %54 : vector<8x1xf32>
    %56 = math.rsqrt %55 : vector<8x1xf32>
    %57 = vector.broadcast %56 : vector<8x1xf32> to vector<8x32xf32>
    %58 = arith.mulf %53, %57 : vector<8x32xf32>
    %59 = vector.broadcast %0 : vector<1x32xf32> to vector<8x32xf32>
    %60 = arith.mulf %58, %59 : vector<8x32xf32>
    %61 = vector.broadcast %1 : vector<1x32xf32> to vector<8x32xf32>
    %62 = arith.addf %60, %61 : vector<8x32xf32>
    %c0_30 = arith.constant 0 : index
    %c0_31 = arith.constant 0 : index
    %c0_32 = arith.constant 0 : index
    %63 = vector.load %arg3[%c0_30, %c0_31, %c0_32] : memref<1x8x32xf32, #tpu.memory_space<vmem>>, vector<1x8x32xf32>
    %64 = vector.shape_cast %63 : vector<1x8x32xf32> to vector<8x32xf32>
    %cst_33 = arith.constant 0.176776692 : f32
    %65 = vector.broadcast %cst_33 : f32 to vector<8x32xf32>
    %66 = arith.mulf %64, %65 : vector<8x32xf32>
    %cst_34 = arith.constant dense<0.000000e+00> : vector<8x8xf32>
    %67 = tpu.matmul %66, %35, %cst_34 {dimension_numbers = #tpu.dot_dimension_numbers<[1], [1], [0], [0], [0, 0, 1, 0], [], []>} : vector<8x32xf32>, vector<8x32xf32>, vector<8x8xf32> -> vector<8x8xf32>
    %cst_35 = arith.constant dense<0xFF800000> : vector<8xf32>
    %68 = vector.multi_reduction <maximumf>, %67, %cst_35 [1] : vector<8x8xf32> to vector<8xf32>
    %69 = vector.shape_cast %68 : vector<8xf32> to vector<8x1xf32>
    %70 = vector.broadcast %69 : vector<8x1xf32> to vector<8x8xf32>
    %71 = arith.subf %67, %70 : vector<8x8xf32>
    %72 = math.exp %71 : vector<8x8xf32>
    %cst_36 = arith.constant dense<0.000000e+00> : vector<8xf32>
    %73 = vector.multi_reduction <add>, %72, %cst_36 [1] : vector<8x8xf32> to vector<8xf32>
    %74 = vector.shape_cast %73 : vector<8xf32> to vector<8x1xf32>
    %75 = tpu.reciprocal %74 {approx = true} : vector<8x1xf32> -> vector<8x1xf32>
    %76 = vector.broadcast %75 : vector<8x1xf32> to vector<8x8xf32>
    %77 = arith.mulf %72, %76 : vector<8x8xf32>
    %cst_37 = arith.constant dense<0.000000e+00> : vector<8x32xf32>
    %78 = tpu.matmul %77, %62, %cst_37 {dimension_numbers = #tpu.dot_dimension_numbers<[1], [0], [0], [1], [0, 0, 1, 1], [], []>} : vector<8x8xf32>, vector<8x32xf32>, vector<8x32xf32> -> vector<8x32xf32>
    %c0_38 = arith.constant 0 : index
    %c0_39 = arith.constant 0 : index
    %79 = vector.load %arg11[%c0_38, %c0_39] : memref<32x32xf32, #tpu.memory_space<vmem>>, vector<32x32xf32>
    %cst_40 = arith.constant dense<0.000000e+00> : vector<8x32xf32>
    %80 = tpu.matmul %78, %79, %cst_40 {dimension_numbers = #tpu.dot_dimension_numbers<[1], [0], [0], [1], [0, 0, 1, 1], [], []>} : vector<8x32xf32>, vector<32x32xf32>, vector<8x32xf32> -> vector<8x32xf32>
    %c0_41 = arith.constant 0 : index
    %c0_42 = arith.constant 0 : index
    %81 = vector.load %arg12[%c0_41, %c0_42] : memref<1x32xf32, #tpu.memory_space<vmem>>, vector<1x32xf32>
    %82 = vector.broadcast %81 : vector<1x32xf32> to vector<8x32xf32>
    %83 = arith.addf %80, %82 : vector<8x32xf32>
    %cst_43 = arith.constant dense<0.000000e+00> : vector<8xf32>
    %84 = vector.multi_reduction <add>, %83, %cst_43 [1] : vector<8x32xf32> to vector<8xf32>
    %85 = vector.shape_cast %84 : vector<8xf32> to vector<8x1xf32>
    %cst_44 = arith.constant 3.200000e+01 : f32
    %86 = vector.broadcast %cst_44 : f32 to vector<8x1xf32>
    %87 = arith.divf %85, %86 : vector<8x1xf32>
    %88 = vector.broadcast %87 : vector<8x1xf32> to vector<8x32xf32>
    %89 = arith.subf %83, %88 : vector<8x32xf32>
    %90 = arith.mulf %89, %89 : vector<8x32xf32>
    %cst_45 = arith.constant dense<0.000000e+00> : vector<8xf32>
    %91 = vector.multi_reduction <add>, %90, %cst_45 [1] : vector<8x32xf32> to vector<8xf32>
    %92 = vector.shape_cast %91 : vector<8xf32> to vector<8x1xf32>
    %cst_46 = arith.constant 3.200000e+01 : f32
    %93 = vector.broadcast %cst_46 : f32 to vector<8x1xf32>
    %94 = arith.divf %92, %93 : vector<8x1xf32>
    %95 = vector.broadcast %87 : vector<8x1xf32> to vector<8x32xf32>
    %96 = arith.subf %83, %95 : vector<8x32xf32>
    %cst_47 = arith.constant 9.99999974E-6 : f32
    %97 = vector.broadcast %cst_47 : f32 to vector<8x1xf32>
    %98 = arith.addf %94, %97 : vector<8x1xf32>
    %99 = math.rsqrt %98 : vector<8x1xf32>
    %100 = vector.broadcast %99 : vector<8x1xf32> to vector<8x32xf32>
    %101 = arith.mulf %96, %100 : vector<8x32xf32>
    %102 = vector.broadcast %0 : vector<1x32xf32> to vector<8x32xf32>
    %103 = arith.mulf %101, %102 : vector<8x32xf32>
    %104 = vector.broadcast %1 : vector<1x32xf32> to vector<8x32xf32>
    %105 = arith.addf %103, %104 : vector<8x32xf32>
    %c0_48 = arith.constant 0 : index
    %c0_49 = arith.constant 0 : index
    %c0_50 = arith.constant 0 : index
    %106 = vector.load %arg2[%c0_48, %c0_49, %c0_50] : memref<1x16x64xf32, #tpu.memory_space<vmem>>, vector<1x16x64xf32>
    %107 = vector.shape_cast %106 : vector<1x16x64xf32> to vector<16x64xf32>
    %c0_51 = arith.constant 0 : index
    %c0_52 = arith.constant 0 : index
    %108 = vector.load %arg13[%c0_51, %c0_52] : memref<64x32xf32, #tpu.memory_space<vmem>>, vector<64x32xf32>
    %cst_53 = arith.constant dense<0.000000e+00> : vector<16x32xf32>
    %109 = tpu.matmul %107, %108, %cst_53 {dimension_numbers = #tpu.dot_dimension_numbers<[1], [0], [0], [1], [0, 0, 1, 1], [], []>} : vector<16x64xf32>, vector<64x32xf32>, vector<16x32xf32> -> vector<16x32xf32>
    %c0_54 = arith.constant 0 : index
    %c0_55 = arith.constant 0 : index
    %110 = vector.load %arg14[%c0_54, %c0_55] : memref<1x32xf32, #tpu.memory_space<vmem>>, vector<1x32xf32>
    %111 = vector.broadcast %110 : vector<1x32xf32> to vector<16x32xf32>
    %112 = arith.addf %109, %111 : vector<16x32xf32>
    %cst_56 = arith.constant dense<0.000000e+00> : vector<16xf32>
    %113 = vector.multi_reduction <add>, %112, %cst_56 [1] : vector<16x32xf32> to vector<16xf32>
    %114 = vector.shape_cast %113 : vector<16xf32> to vector<16x1xf32>
    %cst_57 = arith.constant 3.200000e+01 : f32
    %115 = vector.broadcast %cst_57 : f32 to vector<16x1xf32>
    %116 = arith.divf %114, %115 : vector<16x1xf32>
    %117 = vector.broadcast %116 : vector<16x1xf32> to vector<16x32xf32>
    %118 = arith.subf %112, %117 : vector<16x32xf32>
    %119 = arith.mulf %118, %118 : vector<16x32xf32>
    %cst_58 = arith.constant dense<0.000000e+00> : vector<16xf32>
    %120 = vector.multi_reduction <add>, %119, %cst_58 [1] : vector<16x32xf32> to vector<16xf32>
    %121 = vector.shape_cast %120 : vector<16xf32> to vector<16x1xf32>
    %cst_59 = arith.constant 3.200000e+01 : f32
    %122 = vector.broadcast %cst_59 : f32 to vector<16x1xf32>
    %123 = arith.divf %121, %122 : vector<16x1xf32>
    %124 = vector.broadcast %116 : vector<16x1xf32> to vector<16x32xf32>
    %125 = arith.subf %112, %124 : vector<16x32xf32>
    %cst_60 = arith.constant 9.99999974E-6 : f32
    %126 = vector.broadcast %cst_60 : f32 to vector<16x1xf32>
    %127 = arith.addf %123, %126 : vector<16x1xf32>
    %128 = math.rsqrt %127 : vector<16x1xf32>
    %129 = vector.broadcast %128 : vector<16x1xf32> to vector<16x32xf32>
    %130 = arith.mulf %125, %129 : vector<16x32xf32>
    %131 = vector.broadcast %0 : vector<1x32xf32> to vector<16x32xf32>
    %132 = arith.mulf %130, %131 : vector<16x32xf32>
    %133 = vector.broadcast %1 : vector<1x32xf32> to vector<16x32xf32>
    %134 = arith.addf %132, %133 : vector<16x32xf32>
    %c0_61 = arith.constant 0 : index
    %c0_62 = arith.constant 0 : index
    %135 = vector.load %arg15[%c0_61, %c0_62] : memref<64x32xf32, #tpu.memory_space<vmem>>, vector<64x32xf32>
    %cst_63 = arith.constant dense<0.000000e+00> : vector<16x32xf32>
    %136 = tpu.matmul %107, %135, %cst_63 {dimension_numbers = #tpu.dot_dimension_numbers<[1], [0], [0], [1], [0, 0, 1, 1], [], []>} : vector<16x64xf32>, vector<64x32xf32>, vector<16x32xf32> -> vector<16x32xf32>
    %c0_64 = arith.constant 0 : index
    %c0_65 = arith.constant 0 : index
    %137 = vector.load %arg16[%c0_64, %c0_65] : memref<1x32xf32, #tpu.memory_space<vmem>>, vector<1x32xf32>
    %138 = vector.broadcast %137 : vector<1x32xf32> to vector<16x32xf32>
    %139 = arith.addf %136, %138 : vector<16x32xf32>
    %cst_66 = arith.constant dense<0.000000e+00> : vector<16xf32>
    %140 = vector.multi_reduction <add>, %139, %cst_66 [1] : vector<16x32xf32> to vector<16xf32>
    %141 = vector.shape_cast %140 : vector<16xf32> to vector<16x1xf32>
    %cst_67 = arith.constant 3.200000e+01 : f32
    %142 = vector.broadcast %cst_67 : f32 to vector<16x1xf32>
    %143 = arith.divf %141, %142 : vector<16x1xf32>
    %144 = vector.broadcast %143 : vector<16x1xf32> to vector<16x32xf32>
    %145 = arith.subf %139, %144 : vector<16x32xf32>
    %146 = arith.mulf %145, %145 : vector<16x32xf32>
    %cst_68 = arith.constant dense<0.000000e+00> : vector<16xf32>
    %147 = vector.multi_reduction <add>, %146, %cst_68 [1] : vector<16x32xf32> to vector<16xf32>
    %148 = vector.shape_cast %147 : vector<16xf32> to vector<16x1xf32>
    %cst_69 = arith.constant 3.200000e+01 : f32
    %149 = vector.broadcast %cst_69 : f32 to vector<16x1xf32>
    %150 = arith.divf %148, %149 : vector<16x1xf32>
    %151 = vector.broadcast %143 : vector<16x1xf32> to vector<16x32xf32>
    %152 = arith.subf %139, %151 : vector<16x32xf32>
    %cst_70 = arith.constant 9.99999974E-6 : f32
    %153 = vector.broadcast %cst_70 : f32 to vector<16x1xf32>
    %154 = arith.addf %150, %153 : vector<16x1xf32>
    %155 = math.rsqrt %154 : vector<16x1xf32>
    %156 = vector.broadcast %155 : vector<16x1xf32> to vector<16x32xf32>
    %157 = arith.mulf %152, %156 : vector<16x32xf32>
    %158 = vector.broadcast %0 : vector<1x32xf32> to vector<16x32xf32>
    %159 = arith.mulf %157, %158 : vector<16x32xf32>
    %160 = vector.broadcast %1 : vector<1x32xf32> to vector<16x32xf32>
    %161 = arith.addf %159, %160 : vector<16x32xf32>
    %cst_71 = arith.constant 0.176776692 : f32
    %162 = vector.broadcast %cst_71 : f32 to vector<8x32xf32>
    %163 = arith.mulf %105, %162 : vector<8x32xf32>
    %cst_72 = arith.constant dense<0.000000e+00> : vector<8x16xf32>
    %164 = tpu.matmul %163, %134, %cst_72 {dimension_numbers = #tpu.dot_dimension_numbers<[1], [1], [0], [0], [0, 0, 1, 0], [], []>} : vector<8x32xf32>, vector<16x32xf32>, vector<8x16xf32> -> vector<8x16xf32>
    %c0_73 = arith.constant 0 : index
    %c0_74 = arith.constant 0 : index
    %165 = vector.load %arg4[%c0_73, %c0_74] : memref<8x16xf32, #tpu.memory_space<vmem>>, vector<8x16xf32>
    %166 = arith.addf %164, %165 : vector<8x16xf32>
    %cst_75 = arith.constant dense<0xFF800000> : vector<8xf32>
    %167 = vector.multi_reduction <maximumf>, %166, %cst_75 [1] : vector<8x16xf32> to vector<8xf32>
    %168 = vector.shape_cast %167 : vector<8xf32> to vector<8x1xf32>
    %169 = vector.broadcast %168 : vector<8x1xf32> to vector<8x16xf32>
    %170 = arith.subf %166, %169 : vector<8x16xf32>
    %171 = math.exp %170 : vector<8x16xf32>
    %cst_76 = arith.constant dense<0.000000e+00> : vector<8xf32>
    %172 = vector.multi_reduction <add>, %171, %cst_76 [1] : vector<8x16xf32> to vector<8xf32>
    %173 = vector.shape_cast %172 : vector<8xf32> to vector<8x1xf32>
    %174 = tpu.reciprocal %173 {approx = true} : vector<8x1xf32> -> vector<8x1xf32>
    %175 = vector.broadcast %174 : vector<8x1xf32> to vector<8x16xf32>
    %176 = arith.mulf %171, %175 : vector<8x16xf32>
    %cst_77 = arith.constant dense<0.000000e+00> : vector<8x32xf32>
    %177 = tpu.matmul %176, %161, %cst_77 {dimension_numbers = #tpu.dot_dimension_numbers<[1], [0], [0], [1], [0, 0, 1, 1], [], []>} : vector<8x16xf32>, vector<16x32xf32>, vector<8x32xf32> -> vector<8x32xf32>
    %c0_78 = arith.constant 0 : index
    %c0_79 = arith.constant 0 : index
    %178 = vector.load %arg17[%c0_78, %c0_79] : memref<32x32xf32, #tpu.memory_space<vmem>>, vector<32x32xf32>
    %cst_80 = arith.constant dense<0.000000e+00> : vector<8x32xf32>
    %179 = tpu.matmul %177, %178, %cst_80 {dimension_numbers = #tpu.dot_dimension_numbers<[1], [0], [0], [1], [0, 0, 1, 1], [], []>} : vector<8x32xf32>, vector<32x32xf32>, vector<8x32xf32> -> vector<8x32xf32>
    %c0_81 = arith.constant 0 : index
    %c0_82 = arith.constant 0 : index
    %180 = vector.load %arg18[%c0_81, %c0_82] : memref<1x32xf32, #tpu.memory_space<vmem>>, vector<1x32xf32>
    %181 = vector.broadcast %180 : vector<1x32xf32> to vector<8x32xf32>
    %182 = arith.addf %179, %181 : vector<8x32xf32>
    %cst_83 = arith.constant dense<0.000000e+00> : vector<8xf32>
    %183 = vector.multi_reduction <add>, %182, %cst_83 [1] : vector<8x32xf32> to vector<8xf32>
    %184 = vector.shape_cast %183 : vector<8xf32> to vector<8x1xf32>
    %cst_84 = arith.constant 3.200000e+01 : f32
    %185 = vector.broadcast %cst_84 : f32 to vector<8x1xf32>
    %186 = arith.divf %184, %185 : vector<8x1xf32>
    %187 = vector.broadcast %186 : vector<8x1xf32> to vector<8x32xf32>
    %188 = arith.subf %182, %187 : vector<8x32xf32>
    %189 = arith.mulf %188, %188 : vector<8x32xf32>
    %cst_85 = arith.constant dense<0.000000e+00> : vector<8xf32>
    %190 = vector.multi_reduction <add>, %189, %cst_85 [1] : vector<8x32xf32> to vector<8xf32>
    %191 = vector.shape_cast %190 : vector<8xf32> to vector<8x1xf32>
    %cst_86 = arith.constant 3.200000e+01 : f32
    %192 = vector.broadcast %cst_86 : f32 to vector<8x1xf32>
    %193 = arith.divf %191, %192 : vector<8x1xf32>
    %194 = vector.broadcast %186 : vector<8x1xf32> to vector<8x32xf32>
    %195 = arith.subf %182, %194 : vector<8x32xf32>
    %cst_87 = arith.constant 9.99999974E-6 : f32
    %196 = vector.broadcast %cst_87 : f32 to vector<8x1xf32>
    %197 = arith.addf %193, %196 : vector<8x1xf32>
    %198 = math.rsqrt %197 : vector<8x1xf32>
    %199 = vector.broadcast %198 : vector<8x1xf32> to vector<8x32xf32>
    %200 = arith.mulf %195, %199 : vector<8x32xf32>
    %201 = vector.broadcast %0 : vector<1x32xf32> to vector<8x32xf32>
    %202 = arith.mulf %200, %201 : vector<8x32xf32>
    %203 = vector.broadcast %1 : vector<1x32xf32> to vector<8x32xf32>
    %204 = arith.addf %202, %203 : vector<8x32xf32>
    %c0_88 = arith.constant 0 : index
    %c0_89 = arith.constant 0 : index
    %c0_90 = arith.constant 0 : index
    %205 = vector.load %arg21[%c0_88, %c0_89, %c0_90] : memref<1x8x32xf32, #tpu.memory_space<vmem>>, vector<1x8x32xf32>
    %206 = vector.shape_cast %205 : vector<1x8x32xf32> to vector<8x32xf32>
    %207 = vector.shape_cast %204 : vector<8x32xf32> to vector<1x8x32xf32>
    tpu.vector_store %arg21[%c0_88, %c0_89, %c0_90], %207 {strides = array<i32>} : memref<1x8x32xf32, #tpu.memory_space<vmem>>, vector<1x8x32xf32>,
    return
  }
  func.func @transform_0(%arg0: i32) -> (i32, i32, i32) {
    %c0_i32 = arith.constant 0 : i32
    %c0_i32_0 = arith.constant 0 : i32
    %c0_i32_1 = arith.constant 0 : i32
    return %arg0, %c0_i32, %c0_i32_0 : i32, i32, i32
  }
  func.func @transform_1(%arg0: i32) -> (i32, i32, i32) {
    %c0_i32 = arith.constant 0 : i32
    %c0_i32_0 = arith.constant 0 : i32
    %c0_i32_1 = arith.constant 0 : i32
    return %arg0, %c0_i32, %c0_i32_0 : i32, i32, i32
  }
  func.func @transform_2(%arg0: i32) -> (i32, i32, i32) {
    %c0_i32 = arith.constant 0 : i32
    %c0_i32_0 = arith.constant 0 : i32
    %c0_i32_1 = arith.constant 0 : i32
    %c0_i32_2 = arith.constant 0 : i32
    return %c0_i32, %c0_i32_0, %c0_i32_1 : i32, i32, i32
  }
  func.func @transform_3(%arg0: i32) -> (i32, i32) {
    %c0_i32 = arith.constant 0 : i32
    %c0_i32_0 = arith.constant 0 : i32
    %c0_i32_1 = arith.constant 0 : i32
    return %c0_i32, %c0_i32_0 : i32, i32
  }
  func.func @transform_4(%arg0: i32) -> (i32, i32) {
    %c0_i32 = arith.constant 0 : i32
    %c0_i32_0 = arith.constant 0 : i32
    %c0_i32_1 = arith.constant 0 : i32
    return %c0_i32, %c0_i32_0 : i32, i32
  }
  func.func @transform_5(%arg0: i32) -> (i32, i32) {
    %c0_i32 = arith.constant 0 : i32
    %c0_i32_0 = arith.constant 0 : i32
    %c0_i32_1 = arith.constant 0 : i32
    return %c0_i32, %c0_i32_0 : i32, i32
  }
  func.func @transform_6(%arg0: i32) -> (i32, i32) {
    %c0_i32 = arith.constant 0 : i32
    %c0_i32_0 = arith.constant 0 : i32
    %c0_i32_1 = arith.constant 0 : i32
    return %c0_i32, %c0_i32_0 : i32, i32
  }
  func.func @transform_7(%arg0: i32) -> (i32, i32) {
    %c0_i32 = arith.constant 0 : i32
    %c0_i32_0 = arith.constant 0 : i32
    %c0_i32_1 = arith.constant 0 : i32
    return %c0_i32, %c0_i32_0 : i32, i32
  }
  func.func @transform_8(%arg0: i32) -> (i32, i32) {
    %c0_i32 = arith.constant 0 : i32
    %c0_i32_0 = arith.constant 0 : i32
    %c0_i32_1 = arith.constant 0 : i32
    return %c0_i32, %c0_i32_0 : i32, i32
  }
  func.func @transform_9(%arg0: i32) -> (i32, i32) {
    %c0_i32 = arith.constant 0 : i32
    %c0_i32_0 = arith.constant 0 : i32
    %c0_i32_1 = arith.constant 0 : i32
    return %c0_i32, %c0_i32_0 : i32, i32
  }
  func.func @transform_10(%arg0: i32) -> (i32, i32) {
    %c0_i32 = arith.constant 0 : i32
    %c0_i32_0 = arith.constant 0 : i32
    %c0_i32_1 = arith.constant 0 : i32
    return %c0_i32, %c0_i32_0 : i32, i32
  }
  func.func @transform_11(%arg0: i32) -> (i32, i32) {
    %c0_i32 = arith.constant 0 : i32
    %c0_i32_0 = arith.constant 0 : i32
    %c0_i32_1 = arith.constant 0 : i32
    return %c0_i32, %c0_i32_0 : i32, i32
  }
  func.func @transform_12(%arg0: i32) -> (i32, i32) {
    %c0_i32 = arith.constant 0 : i32
    %c0_i32_0 = arith.constant 0 : i32
    %c0_i32_1 = arith.constant 0 : i32
    return %c0_i32, %c0_i32_0 : i32, i32
  }
  func.func @transform_13(%arg0: i32) -> (i32, i32) {
    %c0_i32 = arith.constant 0 : i32
    %c0_i32_0 = arith.constant 0 : i32
    %c0_i32_1 = arith.constant 0 : i32
    return %c0_i32, %c0_i32_0 : i32, i32
  }
  func.func @transform_14(%arg0: i32) -> (i32, i32) {
    %c0_i32 = arith.constant 0 : i32
    %c0_i32_0 = arith.constant 0 : i32
    %c0_i32_1 = arith.constant 0 : i32
    return %c0_i32, %c0_i32_0 : i32, i32
  }
  func.func @transform_15(%arg0: i32) -> (i32, i32) {
    %c0_i32 = arith.constant 0 : i32
    %c0_i32_0 = arith.constant 0 : i32
    %c0_i32_1 = arith.constant 0 : i32
    return %c0_i32, %c0_i32_0 : i32, i32
  }
  func.func @transform_16(%arg0: i32) -> (i32, i32) {
    %c0_i32 = arith.constant 0 : i32
    %c0_i32_0 = arith.constant 0 : i32
    %c0_i32_1 = arith.constant 0 : i32
    return %c0_i32, %c0_i32_0 : i32, i32
  }
  func.func @transform_17(%arg0: i32) -> (i32, i32) {
    %c0_i32 = arith.constant 0 : i32
    %c0_i32_0 = arith.constant 0 : i32
    %c0_i32_1 = arith.constant 0 : i32
    return %c0_i32, %c0_i32_0 : i32, i32
  }
  func.func @transform_18(%arg0: i32) -> (i32, i32) {
    %c0_i32 = arith.constant 0 : i32
    %c0_i32_0 = arith.constant 0 : i32
    %c0_i32_1 = arith.constant 0 : i32
    return %c0_i32, %c0_i32_0 : i32, i32
  }
  func.func @transform_19(%arg0: i32) -> (i32, i32) {
    %c0_i32 = arith.constant 0 : i32
    %c0_i32_0 = arith.constant 0 : i32
    %c0_i32_1 = arith.constant 0 : i32
    return %c0_i32, %c0_i32_0 : i32, i32
  }
  func.func @transform_20(%arg0: i32) -> (i32, i32, i32) {
    %c0_i32 = arith.constant 0 : i32
    %c0_i32_0 = arith.constant 0 : i32
    %c0_i32_1 = arith.constant 0 : i32
    return %arg0, %c0_i32, %c0_i32_0 : i32, i32, i32
  }
}

</mosaic_0001>

<bundles_post_ra>
// kernel: tpu_custom_call.1
= control target key start
LH: loop header
LB: loop body
LE: loop exit
PB: predicated region body
PF: predicated region fallthrough
CT: control target
= control target key end

     0   :  { %s2618_s0 = inlined_call_operand.vmem [shape: f32[2,8,64], index: 0, kind: input, shape index: {}]   ;;  %s2619_s1 = inlined_call_operand.vmem [shape: f32[2,16,64], index: 1, kind: input, shape index: {}]   ;;  %s2620_s2 = inlined_call_operand.vmem [shape: f32[1,8,32], index: 2, kind: input, shape index: {}]   ;;  %s2621_s3 = inlined_call_operand.vmem [shape: f32[8,16], index: 3, kind: input, shape index: {}]   ;;  %s2622_s4 = inlined_call_operand.vmem [shape: f32[64,32], index: 4, kind: input, shape index: {}]   ;;  %s2623_s5 = inlined_call_operand.vmem [shape: f32[1,32], index: 5, kind: input, shape index: {}]   ;;  %s2624_s6 = inlined_call_operand.vmem [shape: f32[32,32], index: 6, kind: input, shape index: {}]   ;;  %s2625_s7 = inlined_call_operand.vmem [shape: f32[1,32], index: 7, kind: input, shape index: {}]   ;;  %s2626_s8 = inlined_call_operand.vmem [shape: f32[32,32], index: 8, kind: input, shape index: {}]   ;;  %s2627_s9 = inlined_call_operand.vmem [shape: f32[1,32], index: 9, kind: input, shape index: {}]   ;;  %s2628_s10 = inlined_call_operand.vmem [shape: f32[32,32], index: 10, kind: input, shape index: {}]   ;;  %s2629_s11 = inlined_call_operand.vmem [shape: f32[1,32], index: 11, kind: input, shape index: {}]   ;;  %s2630_s12 = inlined_call_operand.vmem [shape: f32[64,32], index: 12, kind: input, shape index: {}]   ;;  %s2631_s13 = inlined_call_operand.vmem [shape: f32[1,32], index: 13, kind: input, shape index: {}]   ;;  %s2632_s14 = inlined_call_operand.vmem [shape: f32[64,32], index: 14, kind: input, shape index: {}]   ;;  %s2633_s15 = inlined_call_operand.vmem [shape: f32[1,32], index: 15, kind: input, shape index: {}]   ;;  %s2634_s16 = inlined_call_operand.vmem [shape: f32[32,32], index: 16, kind: input, shape index: {}]   ;;  %s2635_s17 = inlined_call_operand.vmem [shape: f32[1,32], index: 17, kind: input, shape index: {}]   ;;  %s2636_s18 = inlined_call_operand.vmem [shape: f32[1,32], index: 18, kind: input, shape index: {}]   ;;  %s2637_s19 = inlined_call_operand.vmem [shape: f32[1,32], index: 19, kind: input, shape index: {}]   ;;  %s2638_s20 = inlined_call_operand.hbm [shape: f32[2,8,32], index: 20, kind: output, shape index: {}]  }
   0x1   :  { %2646 = sst [smem:[#allocation11_spill]] %s2618_s0 }
   0x2   :  { %2647 = sst [smem:[#allocation12_spill]] %s2619_s1 }
   0x3   :  { %2648 = sst [smem:[#allocation13_spill]] %s2620_s2 }
   0x4   :  { %2649 = sst [smem:[#allocation14_spill]] %s2621_s3 }
   0x5   :  { %2650 = sst [smem:[#allocation15_spill]] %s2622_s4 }
   0x6   :  { %2651 = sst [smem:[#allocation16_spill]] %s2623_s5 }
   0x7   :  { %25 = vsyncpa [#allocation3], 0 }
   0x8   :  { %27 = vsyncpa [#allocation3 + $0x1], 0  ;;  %s2264_s1 = smov 0   ;;  %s2266_s22 = smov 0  }
   0x9   :  { %s2268_s23 = smov 0   ;;  %s2270_s24 = smov 0  }
   0xa LB: > { %2652 = sst [smem:[#allocation5_spill]] %s2142_s1  ;;  %s2285_s2 = sadd.s32 4294967295, %s2154_s24   ;;  %s2154_s24 = sphi %s2270_s24, %s2669_s24   ;;  %s2150_s23 = sphi %s2268_s23, %s2671_s23   ;;  %s2146_s22 = sphi %s2266_s22, %s2673_s22   ;;  %s2142_s1 = sphi %s2264_s1, %s2672_s1  }
   0xb   : > { %2653 = sst [smem:[#allocation6_spill]] %s2150_s23  ;;  %s1807_s25 = sadd.s32 4294967294, %s2154_s24  }
   0xc   : > { %2654 = sst [smem:[#allocation7_spill]] %s2154_s24  ;;  %s2289_s3 = sadd.s32 1, %s2154_s24  }
   0xd   : > { %2655 = sst [smem:[#allocation8_spill]] %s2289_s3  ;;  %s470_s26 = sadd.s32 1, %s2150_s23 }
   0xe   : > { %s467_s27 = ssub.s32 %s2154_s24, %s2289_s3  ;;  %p480_p0 = scmp.ne.s32.totalorder %s2150_s23, %s2146_s22 }
   0xf   : > { %p468_p1 = scmp.eq.s32.totalorder %s467_s27, 0  ;;  %p481_p2 = scmp.eq.s32.totalorder %s2285_s2, 1 }
  0x10   : > { %p486_p3 = scmp.ne.s32.totalorder %s2146_s22, %s2142_s1  ;;  %p487_p4 = scmp.eq.s32.totalorder %s1807_s25, 1 }
  0x11   : > { %s2300_s28 = scalar_select %p468_p1, %s2150_s23, %s470_s26  }
  0x12   : > { %p2302_p5 = por %p481_p2, %p480_p0  ;;  %p2306_p6 = por %p487_p4, %p486_p3 }
  0x13   : > { %2656 = sst [smem:[#allocation9_spill]] %s2300_s28  ;;  %p1810_p7 = scmp.ge.s32.totalorder %s2154_s24, 1 }
  0x14   : > { %s2658_s29 = scalar_select %p2306_p6, 1, 0 }
  0x15   : > { %p574_p8 = scmp.lt.s32.totalorder %s2154_s24, 3 }
  0x16   : > { %2659 = sst [smem:[#allocation10_spill]] %s2658_s29 }
  0x17   : > { %p575_p9 = pnand %p1810_p7, %p574_p8 }
  0x18   : > { %s2660_s21 = sld [smem:[#allocation15_spill]] (!%p575_p9)  ;;  %p636_p10 = scmp.lt.s32.totalorder (!%p575_p9), %s2285_s2, 1 }
  0x19   : > { %578 = sbr.rel (%p575_p9) target bundleno = 3169 (0xc61), region = 100  ;;  %s2661_s29 = sld [smem:[#allocation11_spill]] (!%p575_p9) }
  0x1a   : > { %s2662_s5 = sld [smem:[#allocation16_spill]] (!%p575_p9)  ;;  %s1841_s28 = sshll.u32 (!%p575_p9), %s2285_s2, 7 }
  0x1b   : > { %s2663_s3 = sld [smem:[#allocation13_spill]] (!%p575_p9) }
  0x1c   : > { %s2664_s24 = sld [smem:[#allocation12_spill]] (!%p575_p9) }
  0x1e   : > { %v655_v0 = vld [vmem:[%s2660_s21 + $0x38] sm:$0xff]  ;;  %v2156_v1 = vmov 0.0   ;;  %v654_v2 = vld [vmem:[%s2660_s21 + $0x30] sm:$0xff]  ;;  %vm2157_vm0 = vmmov 0   ;;  %v653_v4 = vld [vmem:[%s2660_s21 + $0x28] sm:$0xff]  ;;  %s2336_s23 = scalar_select %p636_p10, %s2285_s2, 1 }
  0x1f   : > { %1904 = vmatprep.subr.mxu0 %v2156_v1  ;;  %1920 = vmatprep.mubr.msk.f32.mxu0 %vm2157_vm0, %v2156_v1  ;;  %v740_v3 = vld [vmem:[%s2624_s6 + $0x18] sm:$0xff]  ;;  %v739_v5 = vld [vmem:[%s2624_s6 + $0x10] sm:$0xff]  ;;  %v738_v6 = vld [vmem:[%s2624_s6 + $0x8] sm:$0xff]  ;;  %vm663_vm1 = vcmask 523264   ;;  %vm748_vm2 = vcmask 261120   ;;  %vm1024_vm3 = vcmask 64512  }
  0x20   : > { %1905 = vmatpush3.msra.mxu0 %v655_v0  ;;  %1923 = vmatprep.subr.mxu1 %v2156_v1  ;;  %v652_v7 = vld [vmem:[%s2660_s21 + $0x20] sm:$0xff]  ;;  %v651_v8 = vld [vmem:[%s2660_s21 + $0x18] sm:$0xff]  ;;  %s1812_s27 = sshll.u32 %s2336_s23, 3  ;;  %v650_v9 = vld [vmem:[%s2660_s21 + $0x10] sm:$0xff]  ;;  %s1844_s30 = sshll.u32 %s2336_s23, 4  ;;  %vm1537_vm4 = vcmask 130048  }
  0x21   : > { %1906 = vmatprep.subr.mxu0 %v2156_v1  ;;  %1924 = vmatpush3.msra.mxu1 %v740_v3  ;;  %v649_v10 = vld [vmem:[%s2660_s21 + $0x8] sm:$0xff]  ;;  %s639_s1 = scalar_lea.vmem %s2661_s29, %s1812_s27  ;;  %v648_v11 = vld [vmem:[%s2660_s21] sm:$0xff]  ;;  %v853_v17 = vld [vmem:[%s2626_s8 + $0x18] sm:$0xff]  ;;  %s2158_s2 = smov [#allocation2]  }
  0x22   : > { %1907 = vmatpush3.msra.mxu0 %v654_v2  ;;  %1925 = vmatprep.subr.mxu1 %v2156_v1  ;;  %v647_v12 = vld [vmem:[%s639_s1] sm:$0xff]  ;;  %v852_v19 = vld [vmem:[%s2626_s8 + $0x10] sm:$0xff]  ;;  %v851_v20 = vld [vmem:[%s2626_s8 + $0x8] sm:$0xff]  ;;  %s644_s1 = scalar_lea.vmem %s2664_s24, %s1844_s30  ;;  %s2665_s24 = sld [smem:[#allocation14_spill]] }
  0x23   : > { %1908 = vmatprep.subr.mxu0 %v2156_v1  ;;  %1926 = vmatpush3.msra.mxu1 %v739_v5  ;;  %v737_v13 = vld [vmem:[%s2624_s6] sm:$0xff]  ;;  %v1112_v61 = vld [vmem:[%s2628_s10 + $0x18] sm:$0xff]  ;;  %v1111_v62 = vld [vmem:[%s2628_s10 + $0x10] sm:$0xff]  ;;  %s1734_s30 = scalar_lea.hbm %s2638_s20, %s1841_s28  ;;  %s2098_s29 = sshll.u32 %s2158_s2, 4  ;;  %s2099_s29 = int_to_ptr.vmem [resolvable:$false] %s2098_s29 }
  0x24   : > { %1909 = vmatpush3.msra.mxu0 %v653_v4  ;;  %1927 = vmatprep.subr.mxu1 %v2156_v1  ;;  %v1815_v14 = vld [vmem:[%s2662_s5] ss:$0 sm:$0xff]  ;;  %v1110_v63 = vld [vmem:[%s2628_s10 + $0x8] sm:$0xff] }
  0x25   : > { %1910 = vmatprep.subr.mxu0 %v2156_v1  ;;  %1928 = vmatpush3.msra.mxu1 %v738_v6  ;;  %v850_v21 = vld [vmem:[%s2626_s8] sm:$0xff] }
  0x26   : > { %1911 = vmatpush3.msra.mxu0 %v652_v7  ;;  %1929 = vmatprep.subr.mxu1 %v2156_v1  ;;  %v1817_v22 = vld [vmem:[%s2625_s7] ss:$0 sm:$0xff] }
  0x27   : > { %1912 = vmatprep.subr.mxu0 %v2156_v1  ;;  %1931 = vmatprep.mubr.msk.f32.mxu1 %vm2157_vm0, %v2156_v1  ;;  %v2412_v38 = vld [vmem:[%s2636_s18] ss:$0 sm:$0xff] }
  0x28   : > { %1913 = vmatpush3.msra.mxu0 %v651_v8  ;;  %1930 = vmatpush3.msra.mxu1 %v737_v13  ;;  %v2417_v40 = vld [vmem:[%s2637_s19] ss:$0 sm:$0xff]  ;;  %v1216_v13 = vld [vmem:[%s2630_s12 + $0x30] sm:$0xff] }
  0x29   : > { %1914 = vmatprep.subr.mxu0 %v2156_v1  ;;  %1934 = vmatprep.subr.mxu1 %v2156_v1  ;;  %v946_v42 = vld [vmem:[%s2663_s3] sm:$0xff] }
  0x2a   : > { %1915 = vmatpush3.msra.mxu0 %v650_v9  ;;  %v947_v44 = vmul.f32 0.17677669, %v946_v42  ;;  %v1821_v45 = vld [vmem:[%s2627_s9] ss:$0 sm:$0xff] }
  0x2b   : > { %1916 = vmatprep.subr.mxu0 %v2156_v1 }
  0x2c   : > { %1917 = vmatpush3.msra.mxu0 %v649_v10 }
  0x2d   : > { %1918 = vmatprep.subr.mxu0 %v2156_v1 }
  0x2e   : > { %1919 = vmatpush3.msra.mxu0 %v648_v11  ;;  %v1217_v11 = vld [vmem:[%s2630_s12 + $0x38] sm:$0xff] }
  0x2f   : > { %1921 = vmatmul.mubr.msk.f32.vlgmr.msra.gmra.mxu0 %vm663_vm1, %v647_v12  ;;  %1945 = vmatprep.subr.mxu0 %v2156_v1  ;;  %v1208_v12 = vld [vmem:[%s644_s1] sm:$0xff] }
  0x30   : > { %1947 = vmatprep.mubr.msk.f32.mxu0 %vm2157_vm0, %v2156_v1 }
  0xef   : > { %v733_v15 = vpop.f32.mrf.mxu0 }
  0xf0   : > { %v734_v16 = vadd.f32 %v1815_v14, %v733_v15  ;;  %v1215_v14 = vld [vmem:[%s2630_s12 + $0x28] sm:$0xff]  ;;  %v1214_v15 = vld [vmem:[%s2630_s12 + $0x20] sm:$0xff] }
  0xf1   : > { %v1922_v18 = vpop.f32.mrf.mxu0 }
  0xf2   : > { %1932 = vmatmul.mubr.msk.f32.vlgmr.msra.gmra.mxu1 %vm748_vm2, %v734_v16  ;;  %v1211_v18 = vld [vmem:[%s2630_s12 + $0x8] sm:$0xff] }
  0xf3   : > { %1935 = vmatpush3.msra.mxu1 %v853_v17  ;;  %1942 = vmatprep.mubr.msk.f32.mxu1 %vm2157_vm0, %v2156_v1  ;;  %v1212_v17 = vld [vmem:[%s2630_s12 + $0x10] sm:$0xff] }
  0xf4   : > { %1936 = vmatprep.subr.mxu1 %v2156_v1 }
  0xf5   : > { %1937 = vmatpush3.msra.mxu1 %v852_v19  ;;  %v1210_v19 = vld [vmem:[%s2630_s12] sm:$0xff] }
  0xf6   : > { %1938 = vmatprep.subr.mxu1 %v2156_v1 }
  0xf7   : > { %1939 = vmatpush3.msra.mxu1 %v851_v20  ;;  %v1209_v20 = vld [vmem:[%s644_s1 + $0x8] sm:$0xff] }
  0xf8   : > { %1940 = vmatprep.subr.mxu1 %v2156_v1 }
  0xf9   : > { %1941 = vmatpush3.msra.mxu1 %v850_v21  ;;  %v1109_v21 = vld [vmem:[%s2628_s10] sm:$0xff] }
  0xfa   : > { %1943 = vmatmul.mubr.msk.f32.vlgmr.msra.gmra.mxu1 %vm748_vm2, %v734_v16  ;;  %1950 = vmatprep.subr.mxu1 %v2156_v1  ;;  %v1213_v16 = vld [vmem:[%s2630_s12 + $0x18] sm:$0xff] }
  0xfb   : > { %1952 = vmatprep.mubr.msk.f32.mxu1 %vm2157_vm0, %v2156_v1 }
 0x1b2   : > { %v818_v23 = vpop.f32.mrf.mxu1 }
 0x1b3   : > { %v819_v24 = vadd.f32 %v1817_v22, %v818_v23 }
 0x1b4   : > { %v1933_v25 = vpop.f32.mrf.mxu1 }
 0x1b5   : > { %v822_v26 = vsel %vm748_vm2, %v819_v24, 0.0 }
 0x1b6   : > { %823 = vadd.xlane.f32.xlu0 %v822_v26 }
 0x1ba   : > { %v927_v27 = vpop.f32.mrf.mxu1 }
 0x1bb   : > { %v928_v47 = vadd.f32 %v1821_v45, %v927_v27 }
 0x1bc   : > { %v1944_v28 = vpop.f32.mrf.mxu1 }
 0x1bd   : > { %v931_v50 = vsel %vm748_vm2, %v928_v47, 0.0 }
 0x23f   : > { %v824_v29 = vpop.xlane.xlu0 %823 }
 0x240   : > { %v826_v30 = vmul.f32 0.03125, %v824_v29 }
 0x242   : > { %v827_v31 = vsub.f32 %v819_v24, %v826_v30  ;;  %v1828_v24 = vld [vmem:[%s2631_s13] ss:$0 sm:$0xff] }
 0x244   : > { %v828_v32 = vmul.f32 %v827_v31, %v827_v31 }
 0x246   : > { %v829_v33 = vsel %vm748_vm2, %v828_v32, 0.0  ;;  %v1342_v32 = vld [vmem:[%s2632_s14 + $0x30] sm:$0xff] }
 0x247   : > { %830 = vadd.xlane.f32.xlu0 %v829_v33  ;;  %v1341_v33 = vld [vmem:[%s2632_s14 + $0x28] sm:$0xff] }
 0x2d0   : > { %v831_v34 = vpop.xlane.xlu0 %830 }
 0x2d1   : > { %v832_v35 = vmul.f32 0.03125, %v831_v34  ;;  %v1340_v34 = vld [vmem:[%s2632_s14 + $0x20] sm:$0xff] }
 0x2d3   : > { %v833_v36 = vadd.f32 1e-05, %v832_v35  ;;  %v1339_v35 = vld [vmem:[%s2632_s14 + $0x18] sm:$0xff] }
 0x2d5   : > { %2070 = vrsqrt.f32 %v833_v36  ;;  %v1338_v36 = vld [vmem:[%s2632_s14 + $0x10] sm:$0xff] }
 0x2e2   : > { %v2071_v37 = vpop.eup %2070 }
 0x2e3   : > { %v835_v39 = vmul.f32 %v2071_v37, %v827_v31  ;;  %v1343_v31 = vld [vmem:[%s2632_s14 + $0x38] sm:$0xff]  ;;  %v1337_v37 = vld [vmem:[%s2632_s14 + $0x8] sm:$0xff] }
 0x2e5   : > { %v842_v41 = vmul.f32 %v2412_v38, %v835_v39  ;;  %v1336_v39 = vld [vmem:[%s2632_s14] sm:$0xff] }
 0x2e7   : > { %v849_v43 = vadd.f32 %v2417_v40, %v842_v41 }
 0x2e9   : > { %1946 = vmatpush3.xpose.msk.msra.mxu0 %vm748_vm2, %v849_v43 }
 0x2ea   : > { %1955 = vmatprep.subr.mxu0 %v2156_v1 }
 0x2ec   : > { %1948 = vmatmul.mubr.msk.f32.vlgmr.msra.gmra.mxu0 %vm748_vm2, %v947_v44 }
 0x2ed   : > { %1963 = vmatprep.mubr.msk.f32.mxu0 %vm2157_vm0, %v2156_v1  ;;  %1956 = vmatpush3.msra.mxu0 %v1112_v61 }
 0x2ee   : > { %1957 = vmatprep.subr.mxu0 %v2156_v1 }
 0x2ef   : > { %1958 = vmatpush3.msra.mxu0 %v1111_v62 }
 0x2f0   : > { %1959 = vmatprep.subr.mxu0 %v2156_v1 }
 0x2f1   : > { %1960 = vmatpush3.msra.mxu0 %v1110_v63 }
 0x2f2   : > { %1961 = vmatprep.subr.mxu0 %v2156_v1 }
 0x2f3   : > { %1962 = vmatpush3.msra.mxu0 %v1109_v21 }
 0x2f4   : > { %1985 = vmatprep.subr.mxu0 %v1343_v31 }
 0x3ac   : > { %v1020_v46 = vpop.f32.mrf.mxu0 }
 0x3ad   : > { %v1025_v48 = vsel %vm1024_vm3, %v1020_v46, -inf }
 0x3ae   : > { %1026 = vmax.xlane.f32.xlu1 %v1025_v48  ;;  %v1949_v49 = vpop.f32.mrf.mxu0  ;;  %v1826_v48 = vld [vmem:[%s2629_s11] ss:$0 sm:$0xff] }
 0x3b2   : > { %932 = vadd.xlane.f32.xlu1 %v931_v50 }
 0x437   : > { %v1027_v51 = vpop.xlane.xlu1 %1026 }
 0x438   : > { %v1028_v52 = vsub.f32 %v1020_v46, %v1027_v51 }
 0x43a   : > { %v1029_v53 = vmul.f32 1.442695, %v1028_v52 }
 0x43b   : > { %v933_v54 = vpop.xlane.xlu1 %932 }
 0x43c   : > { %2072 = vpow2.f32 %v1029_v53  ;;  %v934_v55 = vmul.f32 0.03125, %v933_v54 }
 0x43e   : > { %v935_v56 = vsub.f32 %v928_v47, %v934_v55 }
 0x440   : > { %v936_v57 = vmul.f32 %v935_v56, %v935_v56 }
 0x442   : > { %v937_v58 = vsel %vm748_vm2, %v936_v57, 0.0 }
 0x443   : > { %938 = vadd.xlane.f32.xlu0 %v937_v58 }
 0x449   : > { %v2073_v59 = vpop.eup %2072 }
 0x44a   : > { %v1031_v60 = vsel %vm1024_vm3, %v2073_v59, 0.0 }
 0x44b   : > { %1032 = vadd.xlane.f32.xlu1 %v1031_v60 }
 0x4cc   : > { %v939_v0 = vpop.xlane.xlu0 %938 }
 0x4cd   : > { %v940_v2 = vmul.f32 0.03125, %v939_v0 }
 0x4cf   : > { %v941_v3 = vadd.f32 1e-05, %v940_v2 }
 0x4d1   : > { %2074 = vrsqrt.f32 %v941_v3  ;;  %v1831_v3 = vld [vmem:[%s2633_s15] ss:$0 sm:$0xff] }
 0x4d4   : > { %v1033_v4 = vpop.xlane.xlu1 %1032 }
 0x4d5   : > { %2076 = vrcp.f32 %v1033_v4 }
 0x4de   : > { %v2075_v5 = vpop.eup %2074 }
 0x4df   : > { %v943_v6 = vmul.f32 %v2075_v5, %v935_v56 }
 0x4e1   : > { %v944_v7 = vmul.f32 %v2412_v38, %v943_v6 }
 0x4e2   : > { %v2077_v8 = vpop.eup %2076 }
 0x4e3   : > { %v945_v9 = vadd.f32 %v2417_v40, %v944_v7  ;;  %v1035_v10 = vmul.f32 %v2077_v8, %v2073_v59 }
 0x4e5   : > { %1951 = vmatpush3.msra.mxu1 %v945_v9 }
 0x4e6   : > { %1953 = vmatmul.mubr.msk.f32.vlgmr.msra.gmra.mxu1 %vm1024_vm3, %v1035_v10  ;;  %1966 = vmatprep.subr.mxu1 %v1217_v11 }
 0x4e7   : > { %1967 = vmatpush3.msra.mxu1 %v1217_v11  ;;  %1982 = vmatprep.mubr.msk.f32.mxu1 %vm663_vm1, %v1208_v12 }
 0x4e8   : > { %1968 = vmatprep.subr.mxu1 %v1216_v13 }
 0x4e9   : > { %1969 = vmatpush3.msra.mxu1 %v1216_v13 }
 0x4ea   : > { %1970 = vmatprep.subr.mxu1 %v1215_v14 }
 0x4eb   : > { %1971 = vmatpush3.msra.mxu1 %v1215_v14 }
 0x4ec   : > { %1972 = vmatprep.subr.mxu1 %v1214_v15 }
 0x4ed   : > { %1973 = vmatpush3.msra.mxu1 %v1214_v15 }
 0x4ee   : > { %1974 = vmatprep.subr.mxu1 %v1213_v16 }
 0x4ef   : > { %1975 = vmatpush3.msra.mxu1 %v1213_v16 }
 0x4f0   : > { %1976 = vmatprep.subr.mxu1 %v1212_v17 }
 0x4f1   : > { %1977 = vmatpush3.msra.mxu1 %v1212_v17 }
 0x4f2   : > { %1978 = vmatprep.subr.mxu1 %v1211_v18 }
 0x4f3   : > { %1979 = vmatpush3.msra.mxu1 %v1211_v18 }
 0x4f4   : > { %1980 = vmatprep.subr.mxu1 %v1210_v19 }
 0x4f5   : > { %1981 = vmatpush3.msra.mxu1 %v1210_v19 }
 0x4f6   : > { %1983 = vmatmul.mubr.msk.f32.vlgmr.msra.gmra.mxu1 %vm663_vm1, %v1209_v20  ;;  %2004 = vmatprep.subr.mxu1 %v2156_v1 }
 0x4f7   : > { %2008 = vmatprep.mubr.msk.f32.mxu1 %vm2157_vm0, %v2156_v1 }
 0x5a6   : > { %v1105_v22 = vpop.f32.mrf.mxu1 }
 0x5a7   : > { %1964 = vmatmul.mubr.msk.f32.vlgmr.msra.gmra.mxu0 %vm748_vm2, %v1105_v22 }
 0x5a8   : > { %v1954_v23 = vpop.f32.mrf.mxu1  ;;  %2001 = vmatprep.mubr.msk.f32.mxu0 %vm663_vm1, %v1208_v12  ;;  %1986 = vmatpush3.msra.mxu0 %v1343_v31 }
 0x5a9   : > { %1987 = vmatprep.subr.mxu0 %v1342_v32 }
 0x5aa   : > { %1988 = vmatpush3.msra.mxu0 %v1342_v32 }
 0x5ab   : > { %1989 = vmatprep.subr.mxu0 %v1341_v33 }
 0x5ac   : > { %1990 = vmatpush3.msra.mxu0 %v1341_v33 }
 0x5ad   : > { %1991 = vmatprep.subr.mxu0 %v1340_v34 }
 0x5ae   : > { %1992 = vmatpush3.msra.mxu0 %v1340_v34 }
 0x5af   : > { %1993 = vmatprep.subr.mxu0 %v1339_v35 }
 0x5b0   : > { %1994 = vmatpush3.msra.mxu0 %v1339_v35 }
 0x5b1   : > { %1995 = vmatprep.subr.mxu0 %v1338_v36 }
 0x5b2   : > { %1996 = vmatpush3.msra.mxu0 %v1338_v36  ;;  %v1457_v36 = vld [vmem:[%s2665_s24] sm:$0xff]  ;;  %s633_s24 = sand.u32 1, %s2146_s22  }
 0x5b3   : > { %1997 = vmatprep.subr.mxu0 %v1337_v37  ;;  %s1811_s27 = sshll.u32 %s633_s24, 3  ;;  %s1723_s3 = scalar_lea.sflag [#allocation3], %s633_s24 }
 0x5b4   : > { %1998 = vmatpush3.msra.mxu0 %v1337_v37  ;;  %s635_s0 = scalar_lea.vmem [#allocation2], %s1811_s27  ;;  %s2100_s27 = scalar_lea.vmem %s2099_s29, 256 }
 0x5b5   : > { %1999 = vmatprep.subr.mxu0 %v1336_v39  ;;  %s1736_s25 = sshll.u32 %s635_s0, 4  ;;  %s1737_s25 = int_to_ptr.vmem [resolvable:$true] %s1736_s25 }
 0x5b6   : > { %v1984_v25 = vpop.f32.mrf.mxu1  ;;  %2000 = vmatpush3.msra.mxu0 %v1336_v39  ;;  %s2094_s1 = scalar_lea.vmem %s1737_s25, 128  ;;  %p2101_p0 = scmp.lt.s32.totalorder %s1737_s25, %s2099_s29 }
 0x5b7   : > { %v1303_v26 = vadd.f32 %v1984_v25, %v1828_v24  ;;  %2002 = vmatmul.mubr.msk.f32.vlgmr.msra.gmra.mxu0 %vm663_vm1, %v1209_v20  ;;  %2011 = vmatprep.subr.mxu0 %v2156_v1  ;;  %p2095_p11 = scmp.ne.s32.totalorder %s1737_s25, %s2094_s1  ;;  %p2102_p1 = scmp.lt.s32.totalorder %s2100_s27, %s2094_s1 }
 0x5b8   : > { %v1297_v27 = vpop.f32.mrf.mxu1  ;;  %2015 = vmatprep.mubr.msk.f32.mxu0 %vm2157_vm0, %v2156_v1 }
 0x5b9   : > { %v1309_v28 = vsel %vm748_vm2, %v1303_v26, 0.0  ;;  %v1298_v29 = vadd.f32 %v1828_v24, %v1297_v27  ;;  %p2096_p12 = pnand %p2095_p11, %p2302_p5  ;;  %p2103_p2 = por %p2102_p1, %p2101_p0 }
 0x5ba   : > { %1310 = vadd.xlane.f32.xlu0 %v1309_v28 }
 0x5bb   : > { %v1306_v30 = vsel %vm748_vm2, %v1298_v29, 0.0  ;;  %p2097_p13 = pneg %p2096_p12 }
 0x5bc   : > { %1307 = vadd.xlane.f32.xlu1 %v1306_v30 }
 0x5bd   : > { %p2104_p3 = pnand %p2103_p2, %p2097_p13 }
 0x643   : > { %v1311_v41 = vpop.xlane.xlu0 %1310 }
 0x644   : > { %v1313_v42 = vmul.f32 0.03125, %v1311_v41 }
 0x645   : > { %v1308_v46 = vpop.xlane.xlu1 %1307 }
 0x646   : > { %v1315_v43 = vsub.f32 %v1303_v26, %v1313_v42  ;;  %v1312_v47 = vmul.f32 0.03125, %v1308_v46 }
 0x648   : > { %v1317_v44 = vmul.f32 %v1315_v43, %v1315_v43  ;;  %v1314_v49 = vsub.f32 %v1298_v29, %v1312_v47 }
 0x64a   : > { %v1321_v45 = vsel %vm748_vm2, %v1317_v44, 0.0  ;;  %v1316_v54 = vmul.f32 %v1314_v49, %v1314_v49 }
 0x64b   : > { %1322 = vadd.xlane.f32.xlu1 %v1321_v45 }
 0x64c   : > { %v1318_v55 = vsel %vm748_vm2, %v1316_v54, 0.0 }
 0x667   : > { %v1189_v50 = vpop.f32.mrf.mxu0 }
 0x668   : > { %v1190_v51 = vadd.f32 %v1826_v48, %v1189_v50 }
 0x669   : > { %v1965_v52 = vpop.f32.mrf.mxu0 }
 0x66a   : > { %v1193_v53 = vsel %vm748_vm2, %v1190_v51, 0.0 }
 0x66b   : > { %1194 = vadd.xlane.f32.xlu0 %v1193_v53 }
 0x66f   : > { %1319 = vadd.xlane.f32.xlu0 %v1318_v55 }
 0x677   : > { %v2003_v2 = vpop.f32.mrf.mxu0 }
 0x678   : > { %v1423_v8 = vadd.f32 %v2003_v2, %v1831_v3 }
 0x679   : > { %v1417_v39 = vpop.f32.mrf.mxu0 }
 0x67a   : > { %v1429_v11 = vsel %vm748_vm2, %v1423_v8, 0.0  ;;  %v1418_v44 = vadd.f32 %v1831_v3, %v1417_v39 }
 0x67c   : > { %v1426_v45 = vsel %vm748_vm2, %v1418_v44, 0.0 }
 0x6d4   : > { %v1323_v56 = vpop.xlane.xlu1 %1322 }
 0x6d5   : > { %v1325_v57 = vmul.f32 0.03125, %v1323_v56  ;;  %v1625_v56 = vld [vmem:[%s2634_s16 + $0x18] sm:$0xff] }
 0x6d7   : > { %v1327_v58 = vadd.f32 1e-05, %v1325_v57  ;;  %v1624_v57 = vld [vmem:[%s2634_s16 + $0x10] sm:$0xff] }
 0x6d9   : > { %2078 = vrsqrt.f32 %v1327_v58  ;;  %v1623_v58 = vld [vmem:[%s2634_s16 + $0x8] sm:$0xff] }
 0x6e6   : > { %v2079_v59 = vpop.eup %2078 }
 0x6e7   : > { %v1331_v60 = vmul.f32 %v2079_v59, %v1315_v43 }
 0x6e9   : > { %v1333_v61 = vmul.f32 %v2412_v38, %v1331_v60 }
 0x6eb   : > { %v1335_v62 = vadd.f32 %v2417_v40, %v1333_v61 }
 0x6ed   : > { %2005 = vmatpush3.xpose.msk.msra.mxu1 %vm748_vm2, %v1335_v62 }
 0x6ee   : > { %2006 = vmatprep.subr.mxu1 %v2156_v1 }
 0x6f4   : > { %v1195_v63 = vpop.xlane.xlu0 %1194 }
 0x6f5   : > { %v1196_v0 = vmul.f32 0.03125, %v1195_v63 }
 0x6f7   : > { %v1197_v4 = vsub.f32 %v1190_v51, %v1196_v0 }
 0x6f8   : > { %v1320_v5 = vpop.xlane.xlu0 %1319 }
 0x6f9   : > { %v1324_v6 = vmul.f32 0.03125, %v1320_v5  ;;  %v1198_v7 = vmul.f32 %v1197_v4, %v1197_v4 }
 0x6fb   : > { %v1326_v9 = vadd.f32 1e-05, %v1324_v6  ;;  %v1199_v10 = vsel %vm748_vm2, %v1198_v7, 0.0 }
 0x6fc   : > { %1200 = vadd.xlane.f32.xlu1 %v1199_v10 }
 0x6fd   : > { %2080 = vrsqrt.f32 %v1326_v9 }
 0x700   : > { %1430 = vadd.xlane.f32.xlu1 %v1429_v11 }
 0x70a   : > { %v2081_v12 = vpop.eup %2080 }
 0x70b   : > { %v1330_v13 = vmul.f32 %v2081_v12, %v1314_v49 }
 0x70d   : > { %v1332_v14 = vmul.f32 %v2412_v38, %v1330_v13 }
 0x70f   : > { %v1334_v15 = vadd.f32 %v2417_v40, %v1332_v14 }
 0x711   : > { %2007 = vmatpush3.xpose.msk.msra.mxu1 %vm748_vm2, %v1334_v15 }
 0x712   : > { %2018 = vmatprep.subr.mxu1 %v2156_v1 }
 0x785   : > { %v1201_v16 = vpop.xlane.xlu1 %1200 }
 0x786   : > { %v1202_v17 = vmul.f32 0.03125, %v1201_v16 }
 0x788   : > { %v1203_v18 = vadd.f32 1e-05, %v1202_v17 }
 0x789   : > { %v1431_v19 = vpop.xlane.xlu1 %1430 }
 0x78a   : > { %2082 = vrsqrt.f32 %v1203_v18  ;;  %v1433_v20 = vmul.f32 0.03125, %v1431_v19 }
 0x78c   : > { %v1435_v21 = vsub.f32 %v1423_v8, %v1433_v20  ;;  %v1838_v8 = vld [vmem:[%s2635_s17] ss:$0 sm:$0xff] }
 0x78e   : > { %v1437_v22 = vmul.f32 %v1435_v21, %v1435_v21 }
 0x790   : > { %v1441_v23 = vsel %vm748_vm2, %v1437_v22, 0.0 }
 0x791   : > { %1442 = vadd.xlane.f32.xlu1 %v1441_v23 }
 0x797   : > { %v2083_v24 = vpop.eup %2082 }
 0x798   : > { %v1205_v25 = vmul.f32 %v2083_v24, %v1197_v4 }
 0x79a   : > { %v1206_v26 = vmul.f32 %v2412_v38, %v1205_v25 }
 0x79c   : > { %v1207_v27 = vadd.f32 %v2417_v40, %v1206_v26 }
 0x79e   : > { %v1456_v28 = vmul.f32 0.17677669, %v1207_v27 }
 0x7a0   : > { %2009 = vmatmul.mubr.msk.f32.vlgmr.msra.gmra.mxu1 %vm748_vm2, %v1456_v28 }
 0x7a1   : > { %2026 = vmatprep.mubr.msk.f32.mxu1 %vm2157_vm0, %v2156_v1  ;;  %2019 = vmatpush3.msra.mxu1 %v1625_v56 }
 0x7a2   : > { %2020 = vmatprep.subr.mxu1 %v2156_v1 }
 0x7a3   : > { %2021 = vmatpush3.msra.mxu1 %v1624_v57 }
 0x7a4   : > { %2022 = vmatprep.subr.mxu1 %v2156_v1 }
 0x7a5   : > { %2023 = vmatpush3.msra.mxu1 %v1623_v58 }
 0x7a6   : > { %2024 = vmatprep.subr.mxu1 %v2156_v1 }
 0x81a   : > { %v1443_v29 = vpop.xlane.xlu1 %1442 }
 0x81b   : > { %v1445_v30 = vmul.f32 0.03125, %v1443_v29 }
 0x81d   : > { %v1447_v31 = vadd.f32 1e-05, %v1445_v30 }
 0x81f   : > { %2084 = vrsqrt.f32 %v1447_v31 }
 0x82c   : > { %v2085_v32 = vpop.eup %2084 }
 0x82d   : > { %v1451_v33 = vmul.f32 %v2085_v32, %v1435_v21 }
 0x82f   : > { %v1453_v34 = vmul.f32 %v2412_v38, %v1451_v33 }
 0x831   : > { %v1455_v35 = vadd.f32 %v2417_v40, %v1453_v34 }
 0x833   : > { %2012 = vmatpush3.msra.mxu0 %v1455_v35 }
 0x834   : > { %2013 = vmatprep.subr.mxu0 %v2156_v1  ;;  %v1622_v1 = vld [vmem:[%s2634_s16] sm:$0xff] }
 0x835   : > { %2025 = vmatpush3.msra.mxu1 %v1622_v1 }
 0x860   : > { %v1533_v37 = vpop.f32.mrf.mxu1 }
 0x861   : > { %v1534_v41 = vadd.f32 %v1533_v37, %v1457_v36 }
 0x862   : > { %v2010_v42 = vpop.f32.mrf.mxu1 }
 0x863   : > { %v1538_v43 = vsel %vm1537_vm4, %v1534_v41, -inf }
 0x864   : > { %1539 = vmax.xlane.f32.xlu0 %v1538_v43 }
 0x868   : > { %1427 = vadd.xlane.f32.xlu0 %v1426_v45 }
 0x8ed   : > { %v1540_v46 = vpop.xlane.xlu0 %1539 }
 0x8ee   : > { %v1541_v47 = vsub.f32 %v1534_v41, %v1540_v46 }
 0x8f0   : > { %v1542_v48 = vmul.f32 1.442695, %v1541_v47 }
 0x8f1   : > { %v1428_v49 = vpop.xlane.xlu0 %1427 }
 0x8f2   : > { %2086 = vpow2.f32 %v1542_v48  ;;  %v1432_v50 = vmul.f32 0.03125, %v1428_v49 }
 0x8f4   : > { %v1434_v51 = vsub.f32 %v1418_v44, %v1432_v50 }
 0x8f6   : > { %v1436_v52 = vmul.f32 %v1434_v51, %v1434_v51 }
 0x8f8   : > { %v1438_v53 = vsel %vm748_vm2, %v1436_v52, 0.0 }
 0x8f9   : > { %1439 = vadd.xlane.f32.xlu0 %v1438_v53 }
 0x8ff   : > { %v2087_v54 = vpop.eup %2086 }
 0x900   : > { %v1544_v55 = vsel %vm1537_vm4, %v2087_v54, 0.0 }
 0x901   : > { %1545 = vadd.xlane.f32.xlu1 %v1544_v55 }
 0x982   : > { %v1440_v59 = vpop.xlane.xlu0 %1439 }
 0x983   : > { %v1444_v60 = vmul.f32 0.03125, %v1440_v59 }
 0x985   : > { %v1446_v61 = vadd.f32 1e-05, %v1444_v60 }
 0x987   : > { %2088 = vrsqrt.f32 %v1446_v61 }
 0x98a   : > { %v1546_v62 = vpop.xlane.xlu1 %1545 }
 0x98b   : > { %2090 = vrcp.f32 %v1546_v62 }
 0x994   : > { %v2089_v63 = vpop.eup %2088 }
 0x995   : > { %v1450_v0 = vmul.f32 %v2089_v63, %v1434_v51 }
 0x997   : > { %v1452_v2 = vmul.f32 %v2412_v38, %v1450_v0 }
 0x998   : > { %v2091_v3 = vpop.eup %2090 }
 0x999   : > { %v1454_v4 = vadd.f32 %v2417_v40, %v1452_v2  ;;  %v1548_v5 = vmul.f32 %v2091_v3, %v2087_v54 }
 0x99b   : > { %2014 = vmatpush3.msra.mxu0 %v1454_v4 }
 0x99c   : > { %2016 = vmatmul.mubr.msk.f32.vlgmr.msra.gmra.mxu0 %vm1537_vm4, %v1548_v5 }
 0xa5c   : > { %v1618_v6 = vpop.f32.mrf.mxu0 }
 0xa5d   : > { %2027 = vmatmul.mubr.msk.f32.vlgmr.msra.gmra.mxu1 %vm748_vm2, %v1618_v6 }
 0xa5e   : > { %v2017_v7 = vpop.f32.mrf.mxu0 }
 0xb1d   : > { %v1702_v9 = vpop.f32.mrf.mxu1 }
 0xb1e   : > { %v1703_v10 = vadd.f32 %v1838_v8, %v1702_v9 }
 0xb1f   : > { %v2028_v11 = vpop.f32.mrf.mxu1 }
 0xb20   : > { %v1706_v12 = vsel %vm748_vm2, %v1703_v10, 0.0 }
 0xb21   : > { %1707 = vadd.xlane.f32.xlu0 %v1706_v12 }
 0xbaa   : > { %v1708_v13 = vpop.xlane.xlu0 %1707 }
 0xbab   : > { %v1709_v14 = vmul.f32 0.03125, %v1708_v13 }
 0xbad   : > { %v1710_v15 = vsub.f32 %v1703_v10, %v1709_v14 }
 0xbaf   : > { %v1711_v16 = vmul.f32 %v1710_v15, %v1710_v15 }
 0xbb1   : > { %v1712_v17 = vsel %vm748_vm2, %v1711_v16, 0.0 }
 0xbb2   : > { %1713 = vadd.xlane.f32.xlu1 %v1712_v17 }
 0xc3b   : > { %v1714_v18 = vpop.xlane.xlu1 %1713 }
 0xc3c   : > { %v1715_v19 = vmul.f32 0.03125, %v1714_v18 }
 0xc3e   : > { %v1716_v20 = vadd.f32 1e-05, %v1715_v19 }
 0xc40   : > { %2092 = vrsqrt.f32 %v1716_v20 }
 0xc4d   : > { %v2093_v21 = vpop.eup %2092 }
 0xc4e   : > { %v1718_v22 = vmul.f32 %v2093_v21, %v1710_v15 }
 0xc50   : > { %v1719_v23 = vmul.f32 %v2412_v38, %v1718_v22 }
 0xc52   : > { %v1720_v24 = vadd.f32 %v2417_v40, %v1719_v23 }
 0xc54   : > { %1721 = vst.msk [vmem:[%s635_s0] sm:$0xff] %vm748_vm2, %v1720_v24 }
 0xc55   : > { %2107 = shalt.err (!%p2104_p3)
}
 0xc56   : > { %s2108_s23 = scalar_lea.hbm %s1734_s30, 128  ;;  %s2112_s0 = scalar_lea.hbm %s2638_s20, 256 }
 0xc57   : > { %p2109_p4 = scmp.ne.s32.totalorder %s1734_s30, %s2108_s23  ;;  %p2113_p9 = scmp.lt.s32.totalorder %s1734_s30, %s2638_s20 }
 0xc58   : > { %p2114_p10 = scmp.lt.s32.totalorder %s2112_s0, %s2108_s23 }
 0xc59   : > { %p2110_p7 = pnand %p2109_p4, %p2302_p5 }
 0xc5a   : > { %p2115_p11 = por %p2114_p10, %p2113_p9 }
 0xc5b   : > { %p2111_p8 = pneg %p2110_p7 }
 0xc5d   : > { %p2116_p12 = pnand %p2115_p11, %p2111_p8 }
 0xc5f   : > { %2119 = shalt.err (!%p2116_p12)
}
 0xc60   : > { %2029 = dma.vmem_to_hbm [thread:$0]  (%p2302_p5), %s1737_s25, 128, %s1734_s30, %s1723_s3  }
 0xc61 PF: > { %s2666_s1 = sld [smem:[#allocation7_spill]] }
 0xc62   : > { %s2667_s2 = sld [smem:[#allocation5_spill]] }
 0xc67   : > { %p2035_p13 = scmp.ge.s32.totalorder %s2666_s1, 2 }
 0xc68   : > { %s1748_s27 = sand.u32 1, %s2667_s2  }
 0xc69   : > { %p2032_p0 = pnand %p2035_p13, %p2306_p6  ;;  %s1749_s24 = scalar_lea.sflag [#allocation3], %s1748_s27 }
 0xc6b   : > { %p2033_p1 = pneg %p2032_p0 }
 0xc6d   : > { %2137 = dma.done.wait (%p2033_p1), %s1749_s24, 128  }
 0xc6e   : > { %2139 = vsyncadd (%p2033_p1), %s1749_s24, 4294967168  ;;  %s2669_s24 = sld [smem:[#allocation8_spill]]  ;;  %s2672_s1 = smov %s2146_s22 }
 0xc6f   : > { %s2670_s5 = sld [smem:[#allocation6_spill]] }
 0xc70   : > { %s2671_s23 = sld [smem:[#allocation9_spill]] }
 0xc74   : > { %p30_p2 = scmp.ge.s32.totalorder %s2669_s24, 4  }
 0xc75   : > { %s2673_s22 = smov %s2670_s5 }
 0xc76   :  { %32 = sbr.rel (!%p30_p2) target bundleno = 10 (0xa), region = 138 }
 0xc7b   :  { %1754 = vsyncpa [#allocation3], 1 }
 0xc7c   :  { %1756 = vsyncpa [#allocation3 + $0x1], 1 }

</bundles_post_ra>
